<compile_context>
chip_gen: v6e
topology: v6e:2x2x1
jax: 0.10.0
libtpu: 0.0.40
codegen_flags: <defaults>
</compile_context>

<pallas_src>
import functools

import jax
import jax.numpy as jnp
from jax.experimental import pallas as pl
from jax.experimental.pallas import tpu as pltpu


def _conv3x3_kernel(x_ref, w_ref, o_ref, col_ref, *, H, W, nc):
    """3x3 'same' conv for BT images as a fused im2col matmul.

    x_ref:   (BT, Cin, H*W)        images, channels-first, spatial flattened
    w_ref:   (Cout, 9*Cin_pad)     weight slab, column order (ky, kx, ci[+pad])
    o_ref:   (BT, Cout, H*W)       output images
    col_ref: (BT, 9*Cin_pad, H*W)  VMEM scratch: im2col matrix per image
    """
    BT, Cin, HW = x_ref.shape
    Cin_pad = col_ref.shape[1] // 9

    # Boundary masks ("is the (dy,dx) neighbour in-bounds?") on the flattened
    # spatial index p = h*W + w.  Same masks also zero every row-wrap position
    # introduced by the lane rotation below, so roll + mask is exact.
    p = jax.lax.broadcasted_iota(jnp.int32, (1, HW), 1)
    w_idx = p % W
    not_top = p >= W                       # h >= 1
    not_bot = p < (H - 1) * W              # h <= H - 2
    not_left = w_idx >= 1                  # w >= 1
    not_right = w_idx <= W - 2             # w <= W - 2

    w_slab = w_ref[...]                    # (Cout, 9*Cin_pad), hoisted

    if Cin_pad > Cin:
        zpad = jnp.zeros((Cin_pad - Cin, HW), dtype=x_ref.dtype)

    for b in range(BT):                    # static unroll, BT is small
        xb = x_ref[b]                      # (Cin, HW)

        tap = 0
        for dy in (-1, 0, 1):
            for dx in (-1, 0, 1):
                s = dy * W + dx            # flattened shift of this tap
                if s == 0:
                    patch = xb
                else:
                    # patch[p] = xb[(p + s) mod HW]; wraps are masked to zero.
                    patch = pltpu.roll(xb, (-s) % HW, 1)

                conds = []
                if dy == -1:
                    conds.append(not_top)
                elif dy == 1:
                    conds.append(not_bot)
                if dx == -1:
                    conds.append(not_left)
                elif dx == 1:
                    conds.append(not_right)
                if conds:
                    mask = conds[0]
                    for c in conds[1:]:
                        mask = jnp.logical_and(mask, c)
                    patch = jnp.where(mask, patch, 0)

                if Cin_pad > Cin:
                    # Fill the sublane-pad rows with zeros so the store covers
                    # the full (Cin_pad, HW) tile (unmasked) and the scratch
                    # never holds garbage (pad weight columns are zero anyway).
                    patch = jnp.concatenate([patch, zpad], axis=0)

                col_ref[b, tap * Cin_pad:(tap + 1) * Cin_pad, :] = patch
                tap += 1

        # Single MXU contraction per image, chunked over the lane dim so the
        # live f32 result stays small when HW is large.
        for c0 in range(0, HW, nc):
            out = jnp.dot(w_slab, col_ref[b, :, c0:c0 + nc],
                          preferred_element_type=jnp.float32)   # (Cout, nc)
            o_ref[b, :, c0:c0 + nc] = out.astype(o_ref.dtype)


def _sublane_rows(dtype):
    # 8 rows per sublane tile for 4-byte types, 16 for 2-byte, 32 for 1-byte.
    return 8 * (4 // jnp.dtype(dtype).itemsize)


def _pick_lane_chunk(HW):
    """Largest lane chunk (<= 2048, 128-multiple divisor of HW) for the dot."""
    if HW <= 2048:
        return HW
    for nc in range(2048, 127, -128):
        if HW % nc == 0:
            return nc
    return HW


def _pick_images_per_step(B, bytes_per_image, budget=8 << 20):
    """Largest divisor of B that fits the VMEM budget and keeps >=2 grid steps
    whenever B >= 2 (so both v7x TensorCores get work)."""
    cap = max(1, budget // max(bytes_per_image, 1))
    best = 1
    for bt in range(1, B + 1):
        if B % bt:
            continue
        if bt > cap:
            break
        if B // bt >= 2 or B == 1:
            best = bt
    return best


@jax.jit
def merge_block_forward(x_nchw, weight_oihw):
    """MergeBlock.forward(x) for the default (conv-only) configuration.

    x_nchw:      (B, Cin, H, W)    -- same layout as the PyTorch module input
    weight_oihw: (Cout, Cin, 3, 3) -- nn.Conv2d(Cin, Cout, 3, padding=1, bias=False)
    returns:     (B, Cout, H, W)
    """
    B, Cin, H, W = x_nchw.shape
    Cout = weight_oihw.shape[0]
    HW = H * W
    dtype = x_nchw.dtype
    itm = jnp.dtype(dtype).itemsize

    sub = _sublane_rows(dtype)
    Cin_pad = ((Cin + sub - 1) // sub) * sub          # sublane-aligned tap rows

    # Free reshape only; the weight repack (+ zero pad columns) is a few KB.
    # NOTE: col scratch inherits x's dtype, so a bf16 input does the im2col
    # masking in bf16 (accumulation stays f32 via preferred_element_type).
    x_flat = x_nchw.reshape(B, Cin, HW)
    w_r = jnp.transpose(weight_oihw, (0, 2, 3, 1))                # (Cout,3,3,Cin)
    w_r = jnp.pad(w_r, ((0, 0), (0, 0), (0, 0), (0, Cin_pad - Cin)))
    w_slab = w_r.reshape(Cout, 9 * Cin_pad).astype(dtype)

    bytes_per_image = (2 * (Cin + Cout) * HW + 9 * Cin_pad * HW) * itm
    BT = _pick_images_per_step(B, bytes_per_image)
    nc = _pick_lane_chunk(HW)

    out_flat = pl.pallas_call(
        functools.partial(_conv3x3_kernel, H=H, W=W, nc=nc),
        out_shape=jax.ShapeDtypeStruct((B, Cout, HW), dtype),
        grid=(B // BT,),
        in_specs=[
            pl.BlockSpec((BT, Cin, HW), lambda g: (g, 0, 0)),
            pl.BlockSpec((Cout, 9 * Cin_pad), lambda g: (0, 0)),
        ],
        out_specs=pl.BlockSpec((BT, Cout, HW), lambda g: (g, 0, 0)),
        scratch_shapes=[pltpu.VMEM((BT, 9 * Cin_pad, HW), dtype)],
        compiler_params=pltpu.CompilerParams(
            dimension_semantics=("parallel",),
            vmem_limit_bytes=32 * 1024 * 1024),
    )(x_flat, w_slab)

    return out_flat.reshape(B, Cout, H, W)


# TODO(synk): the use_feat_cluster / use_self_attention branches depend on
# external `make('constell-*')` factories not included in the reference, so only
# the default (conv-only) forward path is implemented.


if __name__ == "__main__":
    key = jax.random.PRNGKey(0)
    B, Cin, Cout, H, W = 2, 4, 8, 16, 16

    kx, kw = jax.random.split(key)
    x = jax.random.normal(kx, (B, Cin, H, W), dtype=jnp.float32)
    # Deterministic Kaiming-ish init for the conv3x3 weight (no checkpoint load).
    fan_in = Cin * 3 * 3
    weight = jax.random.normal(kw, (Cout, Cin, 3, 3), dtype=jnp.float32) * (2.0 / fan_in) ** 0.5

    out = merge_block_forward(x, weight)
    out = jax.block_until_ready(out)

    # Reference: XLA conv with the same semantics as nn.Conv2d(..., padding=1, bias=False).
    ref = jax.lax.conv_general_dilated(
        x, weight, window_strides=(1, 1), padding=((1, 1), (1, 1)),
        dimension_numbers=("NCHW", "OIHW", "NCHW"))
    assert out.shape == (B, Cout, H, W)
    assert jnp.allclose(out, ref, atol=1e-4, rtol=1e-4)

    print("KERNEL_OK")
</pallas_src>

<mosaic_0001>
module attributes {stable_mosaic.version = 11 : i64} {
  func.func @_conv3x3_kernel(%arg0: i32, %arg1: memref<1x4x256xf32, #tpu.memory_space<vmem>>, %arg2: memref<8x72xf32, #tpu.memory_space<vmem>>, %arg3: memref<1x8x256xf32, #tpu.memory_space<vmem>>, %arg4: memref<1x72x256xf32, #tpu.memory_space<vmem>>) attributes {dimension_semantics = [#tpu.dimension_semantics<parallel>], iteration_bounds = array<i64: 2>, scalar_prefetch = 0 : i64, scratch_operands = 1 : i64, tpu.core_type = #tpu.core_type<tc>, window_params = [{transform_indices = @transform_0, window_bounds = array<i64: 1, 4, 256>}, {pipeline_mode = #tpu.pipeline_mode<synchronous>, transform_indices = @transform_1, window_bounds = array<i64: 8, 72>}, {transform_indices = @transform_2, window_bounds = array<i64: 1, 8, 256>}]} {
    %0 = tpu.iota {dimensions = array<i32: 1>} : vector<1x256xi32>
    %c16_i32 = arith.constant 16 : i32
    %c0_i32 = arith.constant 0 : i32
    %1 = arith.cmpi eq, %c16_i32, %c0_i32 : i32
    %c1_i32 = arith.constant 1 : i32
    %2 = arith.select %1, %c1_i32, %c16_i32 : i32
    %3 = vector.broadcast %2 : i32 to vector<1x256xi32>
    %4 = arith.remsi %0, %3 : vector<1x256xi32>
    %c0_i32_0 = arith.constant 0 : i32
    %5 = vector.broadcast %c0_i32_0 : i32 to vector<1x256xi32>
    %6 = arith.cmpi ne, %4, %5 : vector<1x256xi32>
    %c0_i32_1 = arith.constant 0 : i32
    %7 = vector.broadcast %c0_i32_1 : i32 to vector<1x256xi32>
    %8 = arith.cmpi slt, %4, %7 : vector<1x256xi32>
    %c0_i32_2 = arith.constant 0 : i32
    %9 = arith.cmpi slt, %2, %c0_i32_2 : i32
    %10 = vector.broadcast %9 : i1 to vector<1x256xi1>
    %11 = vector.broadcast %10 : vector<1x256xi1> to vector<1x256xi1>
    %12 = arith.xori %8, %11 : vector<1x256xi1>
    %13 = arith.andi %12, %6 : vector<1x256xi1>
    %14 = vector.broadcast %2 : i32 to vector<1x256xi32>
    %15 = arith.addi %4, %14 : vector<1x256xi32>
    %16 = arith.select %13, %15, %4 : vector<1x256xi1>, vector<1x256xi32>
    %c16_i32_3 = arith.constant 16 : i32
    %17 = vector.broadcast %c16_i32_3 : i32 to vector<1x256xi32>
    %18 = arith.cmpi sge, %0, %17 : vector<1x256xi32>
    %c240_i32 = arith.constant 240 : i32
    %19 = vector.broadcast %c240_i32 : i32 to vector<1x256xi32>
    %20 = arith.cmpi slt, %0, %19 : vector<1x256xi32>
    %c1_i32_4 = arith.constant 1 : i32
    %21 = vector.broadcast %c1_i32_4 : i32 to vector<1x256xi32>
    %22 = arith.cmpi sge, %16, %21 : vector<1x256xi32>
    %c14_i32 = arith.constant 14 : i32
    %23 = vector.broadcast %c14_i32 : i32 to vector<1x256xi32>
    %24 = arith.cmpi sle, %16, %23 : vector<1x256xi32>
    %c0 = arith.constant 0 : index
    %c0_5 = arith.constant 0 : index
    %25 = vector.load %arg2[%c0, %c0_5] : memref<8x72xf32, #tpu.memory_space<vmem>>, vector<8x72xf32>
    %cst = arith.constant 0.000000e+00 : f32
    %26 = vector.broadcast %cst : f32 to vector<4x256xf32>
    %c0_6 = arith.constant 0 : index
    %c0_7 = arith.constant 0 : index
    %c0_8 = arith.constant 0 : index
    %27 = vector.load %arg1[%c0_6, %c0_7, %c0_8] : memref<1x4x256xf32, #tpu.memory_space<vmem>>, vector<1x4x256xf32>
    %28 = vector.shape_cast %27 : vector<1x4x256xf32> to vector<4x256xf32>
    %c17_i32 = arith.constant 17 : i32
    %29 = tpu.dynamic_rotate %28 by %c17_i32 dim 1 : vector<4x256xf32>, i32 -> vector<4x256xf32>
    %30 = arith.andi %18, %22 : vector<1x256xi1>
    %c0_i32_9 = arith.constant 0 : i32
    %31 = arith.sitofp %c0_i32_9 : i32 to f32
    %32 = vector.shape_cast %30 : vector<1x256xi1> to vector<1x256xi1>
    %33 = vector.broadcast %32 : vector<1x256xi1> to vector<4x256xi1>
    %34 = vector.broadcast %31 : f32 to vector<4x256xf32>
    %35 = arith.select %33, %29, %34 : vector<4x256xi1>, vector<4x256xf32>
    %36 = tpu.concatenate %35, %26 in 0 : vector<4x256xf32>, vector<4x256xf32> -> vector<8x256xf32>
    %c0_10 = arith.constant 0 : index
    %c0_11 = arith.constant 0 : index
    %c0_12 = arith.constant 0 : index
    %37 = vector.load %arg4[%c0_10, %c0_11, %c0_12] : memref<1x72x256xf32, #tpu.memory_space<vmem>>, vector<1x8x256xf32>
    %38 = vector.shape_cast %37 : vector<1x8x256xf32> to vector<8x256xf32>
    %39 = vector.shape_cast %36 : vector<8x256xf32> to vector<1x8x256xf32>
    tpu.vector_store %arg4[%c0_10, %c0_11, %c0_12], %39 {strides = array<i32>} : memref<1x72x256xf32, #tpu.memory_space<vmem>>, vector<1x8x256xf32>,
    %c16_i32_13 = arith.constant 16 : i32
    %40 = tpu.dynamic_rotate %28 by %c16_i32_13 dim 1 : vector<4x256xf32>, i32 -> vector<4x256xf32>
    %c0_i32_14 = arith.constant 0 : i32
    %41 = arith.sitofp %c0_i32_14 : i32 to f32
    %42 = vector.shape_cast %18 : vector<1x256xi1> to vector<1x256xi1>
    %43 = vector.broadcast %42 : vector<1x256xi1> to vector<4x256xi1>
    %44 = vector.broadcast %41 : f32 to vector<4x256xf32>
    %45 = arith.select %43, %40, %44 : vector<4x256xi1>, vector<4x256xf32>
    %46 = tpu.concatenate %45, %26 in 0 : vector<4x256xf32>, vector<4x256xf32> -> vector<8x256xf32>
    %c0_15 = arith.constant 0 : index
    %c8 = arith.constant 8 : index
    %c0_16 = arith.constant 0 : index
    %47 = vector.load %arg4[%c0_15, %c8, %c0_16] : memref<1x72x256xf32, #tpu.memory_space<vmem>>, vector<1x8x256xf32>
    %48 = vector.shape_cast %47 : vector<1x8x256xf32> to vector<8x256xf32>
    %49 = vector.shape_cast %46 : vector<8x256xf32> to vector<1x8x256xf32>
    tpu.vector_store %arg4[%c0_15, %c8, %c0_16], %49 {strides = array<i32>} : memref<1x72x256xf32, #tpu.memory_space<vmem>>, vector<1x8x256xf32>,
    %c15_i32 = arith.constant 15 : i32
    %50 = tpu.dynamic_rotate %28 by %c15_i32 dim 1 : vector<4x256xf32>, i32 -> vector<4x256xf32>
    %51 = arith.andi %18, %24 : vector<1x256xi1>
    %c0_i32_17 = arith.constant 0 : i32
    %52 = arith.sitofp %c0_i32_17 : i32 to f32
    %53 = vector.shape_cast %51 : vector<1x256xi1> to vector<1x256xi1>
    %54 = vector.broadcast %53 : vector<1x256xi1> to vector<4x256xi1>
    %55 = vector.broadcast %52 : f32 to vector<4x256xf32>
    %56 = arith.select %54, %50, %55 : vector<4x256xi1>, vector<4x256xf32>
    %57 = tpu.concatenate %56, %26 in 0 : vector<4x256xf32>, vector<4x256xf32> -> vector<8x256xf32>
    %c0_18 = arith.constant 0 : index
    %c16 = arith.constant 16 : index
    %c0_19 = arith.constant 0 : index
    %58 = vector.load %arg4[%c0_18, %c16, %c0_19] : memref<1x72x256xf32, #tpu.memory_space<vmem>>, vector<1x8x256xf32>
    %59 = vector.shape_cast %58 : vector<1x8x256xf32> to vector<8x256xf32>
    %60 = vector.shape_cast %57 : vector<8x256xf32> to vector<1x8x256xf32>
    tpu.vector_store %arg4[%c0_18, %c16, %c0_19], %60 {strides = array<i32>} : memref<1x72x256xf32, #tpu.memory_space<vmem>>, vector<1x8x256xf32>,
    %c1_i32_20 = arith.constant 1 : i32
    %61 = tpu.dynamic_rotate %28 by %c1_i32_20 dim 1 : vector<4x256xf32>, i32 -> vector<4x256xf32>
    %c0_i32_21 = arith.constant 0 : i32
    %62 = arith.sitofp %c0_i32_21 : i32 to f32
    %63 = vector.shape_cast %22 : vector<1x256xi1> to vector<1x256xi1>
    %64 = vector.broadcast %63 : vector<1x256xi1> to vector<4x256xi1>
    %65 = vector.broadcast %62 : f32 to vector<4x256xf32>
    %66 = arith.select %64, %61, %65 : vector<4x256xi1>, vector<4x256xf32>
    %67 = tpu.concatenate %66, %26 in 0 : vector<4x256xf32>, vector<4x256xf32> -> vector<8x256xf32>
    %c0_22 = arith.constant 0 : index
    %c24 = arith.constant 24 : index
    %c0_23 = arith.constant 0 : index
    %68 = vector.load %arg4[%c0_22, %c24, %c0_23] : memref<1x72x256xf32, #tpu.memory_space<vmem>>, vector<1x8x256xf32>
    %69 = vector.shape_cast %68 : vector<1x8x256xf32> to vector<8x256xf32>
    %70 = vector.shape_cast %67 : vector<8x256xf32> to vector<1x8x256xf32>
    tpu.vector_store %arg4[%c0_22, %c24, %c0_23], %70 {strides = array<i32>} : memref<1x72x256xf32, #tpu.memory_space<vmem>>, vector<1x8x256xf32>,
    %71 = tpu.concatenate %28, %26 in 0 : vector<4x256xf32>, vector<4x256xf32> -> vector<8x256xf32>
    %c0_24 = arith.constant 0 : index
    %c32 = arith.constant 32 : index
    %c0_25 = arith.constant 0 : index
    %72 = vector.load %arg4[%c0_24, %c32, %c0_25] : memref<1x72x256xf32, #tpu.memory_space<vmem>>, vector<1x8x256xf32>
    %73 = vector.shape_cast %72 : vector<1x8x256xf32> to vector<8x256xf32>
    %74 = vector.shape_cast %71 : vector<8x256xf32> to vector<1x8x256xf32>
    tpu.vector_store %arg4[%c0_24, %c32, %c0_25], %74 {strides = array<i32>} : memref<1x72x256xf32, #tpu.memory_space<vmem>>, vector<1x8x256xf32>,
    %c255_i32 = arith.constant 255 : i32
    %75 = tpu.dynamic_rotate %28 by %c255_i32 dim 1 : vector<4x256xf32>, i32 -> vector<4x256xf32>
    %c0_i32_26 = arith.constant 0 : i32
    %76 = arith.sitofp %c0_i32_26 : i32 to f32
    %77 = vector.shape_cast %24 : vector<1x256xi1> to vector<1x256xi1>
    %78 = vector.broadcast %77 : vector<1x256xi1> to vector<4x256xi1>
    %79 = vector.broadcast %76 : f32 to vector<4x256xf32>
    %80 = arith.select %78, %75, %79 : vector<4x256xi1>, vector<4x256xf32>
    %81 = tpu.concatenate %80, %26 in 0 : vector<4x256xf32>, vector<4x256xf32> -> vector<8x256xf32>
    %c0_27 = arith.constant 0 : index
    %c40 = arith.constant 40 : index
    %c0_28 = arith.constant 0 : index
    %82 = vector.load %arg4[%c0_27, %c40, %c0_28] : memref<1x72x256xf32, #tpu.memory_space<vmem>>, vector<1x8x256xf32>
    %83 = vector.shape_cast %82 : vector<1x8x256xf32> to vector<8x256xf32>
    %84 = vector.shape_cast %81 : vector<8x256xf32> to vector<1x8x256xf32>
    tpu.vector_store %arg4[%c0_27, %c40, %c0_28], %84 {strides = array<i32>} : memref<1x72x256xf32, #tpu.memory_space<vmem>>, vector<1x8x256xf32>,
    %c241_i32 = arith.constant 241 : i32
    %85 = tpu.dynamic_rotate %28 by %c241_i32 dim 1 : vector<4x256xf32>, i32 -> vector<4x256xf32>
    %86 = arith.andi %20, %22 : vector<1x256xi1>
    %c0_i32_29 = arith.constant 0 : i32
    %87 = arith.sitofp %c0_i32_29 : i32 to f32
    %88 = vector.shape_cast %86 : vector<1x256xi1> to vector<1x256xi1>
    %89 = vector.broadcast %88 : vector<1x256xi1> to vector<4x256xi1>
    %90 = vector.broadcast %87 : f32 to vector<4x256xf32>
    %91 = arith.select %89, %85, %90 : vector<4x256xi1>, vector<4x256xf32>
    %92 = tpu.concatenate %91, %26 in 0 : vector<4x256xf32>, vector<4x256xf32> -> vector<8x256xf32>
    %c0_30 = arith.constant 0 : index
    %c48 = arith.constant 48 : index
    %c0_31 = arith.constant 0 : index
    %93 = vector.load %arg4[%c0_30, %c48, %c0_31] : memref<1x72x256xf32, #tpu.memory_space<vmem>>, vector<1x8x256xf32>
    %94 = vector.shape_cast %93 : vector<1x8x256xf32> to vector<8x256xf32>
    %95 = vector.shape_cast %92 : vector<8x256xf32> to vector<1x8x256xf32>
    tpu.vector_store %arg4[%c0_30, %c48, %c0_31], %95 {strides = array<i32>} : memref<1x72x256xf32, #tpu.memory_space<vmem>>, vector<1x8x256xf32>,
    %c240_i32_32 = arith.constant 240 : i32
    %96 = tpu.dynamic_rotate %28 by %c240_i32_32 dim 1 : vector<4x256xf32>, i32 -> vector<4x256xf32>
    %c0_i32_33 = arith.constant 0 : i32
    %97 = arith.sitofp %c0_i32_33 : i32 to f32
    %98 = vector.shape_cast %20 : vector<1x256xi1> to vector<1x256xi1>
    %99 = vector.broadcast %98 : vector<1x256xi1> to vector<4x256xi1>
    %100 = vector.broadcast %97 : f32 to vector<4x256xf32>
    %101 = arith.select %99, %96, %100 : vector<4x256xi1>, vector<4x256xf32>
    %102 = tpu.concatenate %101, %26 in 0 : vector<4x256xf32>, vector<4x256xf32> -> vector<8x256xf32>
    %c0_34 = arith.constant 0 : index
    %c56 = arith.constant 56 : index
    %c0_35 = arith.constant 0 : index
    %103 = vector.load %arg4[%c0_34, %c56, %c0_35] : memref<1x72x256xf32, #tpu.memory_space<vmem>>, vector<1x8x256xf32>
    %104 = vector.shape_cast %103 : vector<1x8x256xf32> to vector<8x256xf32>
    %105 = vector.shape_cast %102 : vector<8x256xf32> to vector<1x8x256xf32>
    tpu.vector_store %arg4[%c0_34, %c56, %c0_35], %105 {strides = array<i32>} : memref<1x72x256xf32, #tpu.memory_space<vmem>>, vector<1x8x256xf32>,
    %c239_i32 = arith.constant 239 : i32
    %106 = tpu.dynamic_rotate %28 by %c239_i32 dim 1 : vector<4x256xf32>, i32 -> vector<4x256xf32>
    %107 = arith.andi %20, %24 : vector<1x256xi1>
    %c0_i32_36 = arith.constant 0 : i32
    %108 = arith.sitofp %c0_i32_36 : i32 to f32
    %109 = vector.shape_cast %107 : vector<1x256xi1> to vector<1x256xi1>
    %110 = vector.broadcast %109 : vector<1x256xi1> to vector<4x256xi1>
    %111 = vector.broadcast %108 : f32 to vector<4x256xf32>
    %112 = arith.select %110, %106, %111 : vector<4x256xi1>, vector<4x256xf32>
    %113 = tpu.concatenate %112, %26 in 0 : vector<4x256xf32>, vector<4x256xf32> -> vector<8x256xf32>
    %c0_37 = arith.constant 0 : index
    %c64 = arith.constant 64 : index
    %c0_38 = arith.constant 0 : index
    %114 = vector.load %arg4[%c0_37, %c64, %c0_38] : memref<1x72x256xf32, #tpu.memory_space<vmem>>, vector<1x8x256xf32>
    %115 = vector.shape_cast %114 : vector<1x8x256xf32> to vector<8x256xf32>
    %116 = vector.shape_cast %113 : vector<8x256xf32> to vector<1x8x256xf32>
    tpu.vector_store %arg4[%c0_37, %c64, %c0_38], %116 {strides = array<i32>} : memref<1x72x256xf32, #tpu.memory_space<vmem>>, vector<1x8x256xf32>,
    %c0_39 = arith.constant 0 : index
    %c0_40 = arith.constant 0 : index
    %c0_41 = arith.constant 0 : index
    %117 = vector.load %arg4[%c0_39, %c0_40, %c0_41] : memref<1x72x256xf32, #tpu.memory_space<vmem>>, vector<1x72x256xf32>
    %118 = vector.shape_cast %117 : vector<1x72x256xf32> to vector<72x256xf32>
    %cst_42 = arith.constant dense<0.000000e+00> : vector<8x256xf32>
    %119 = tpu.matmul %25, %118, %cst_42 {dimension_numbers = #tpu.dot_dimension_numbers<[1], [0], [0], [1], [0, 0, 1, 1], [], []>} : vector<8x72xf32>, vector<72x256xf32>, vector<8x256xf32> -> vector<8x256xf32>
    %c0_43 = arith.constant 0 : index
    %c0_44 = arith.constant 0 : index
    %c0_45 = arith.constant 0 : index
    %120 = vector.load %arg3[%c0_43, %c0_44, %c0_45] : memref<1x8x256xf32, #tpu.memory_space<vmem>>, vector<1x8x256xf32>
    %121 = vector.shape_cast %120 : vector<1x8x256xf32> to vector<8x256xf32>
    %122 = vector.shape_cast %119 : vector<8x256xf32> to vector<1x8x256xf32>
    tpu.vector_store %arg3[%c0_43, %c0_44, %c0_45], %122 {strides = array<i32>} : memref<1x8x256xf32, #tpu.memory_space<vmem>>, vector<1x8x256xf32>,
    return
  }
  func.func @transform_0(%arg0: i32) -> (i32, i32, i32) {
    %c0_i32 = arith.constant 0 : i32
    %c0_i32_0 = arith.constant 0 : i32
    %c0_i32_1 = arith.constant 0 : i32
    return %arg0, %c0_i32, %c0_i32_0 : i32, i32, i32
  }
  func.func @transform_1(%arg0: i32) -> (i32, i32) {
    %c0_i32 = arith.constant 0 : i32
    %c0_i32_0 = arith.constant 0 : i32
    %c0_i32_1 = arith.constant 0 : i32
    return %c0_i32, %c0_i32_0 : i32, i32
  }
  func.func @transform_2(%arg0: i32) -> (i32, i32, i32) {
    %c0_i32 = arith.constant 0 : i32
    %c0_i32_0 = arith.constant 0 : i32
    %c0_i32_1 = arith.constant 0 : i32
    return %arg0, %c0_i32, %c0_i32_0 : i32, i32, i32
  }
}

</mosaic_0001>

<bundles_post_ra>
// kernel: merge_block_forward.1
= control target key start
LH: loop header
LB: loop body
LE: loop exit
PB: predicated region body
PF: predicated region fallthrough
CT: control target
= control target key end

     0   :  { %s565_s9 = smov 0   ;;  %s715_s0 = inlined_call_operand.vmem [shape: f32[2,4,256], index: 0, kind: input, shape index: {}]   ;;  %s716_s1 = inlined_call_operand.vmem [shape: f32[8,72], index: 1, kind: input, shape index: {}]   ;;  %s717_s2 = inlined_call_operand.vmem [shape: f32[2,8,256], index: 2, kind: output, shape index: {}]  }
   0x1 LB: > { %s483_s10 = sadd.s32 4294967295, %s539_s9   ;;  %p487_p0 = scmp.ge.s32.totalorder %s539_s9, 1  ;;  %s539_s9 = sphi %s565_s9, %s12_s9  }
   0x2   : > { %p112_p1 = scmp.lt.s32.totalorder %s539_s9, 3 }
   0x4   : > { %p113_p2 = pnand %p487_p0, %p112_p1 }
   0x5   : > { %p134_p3 = scmp.lt.s32.totalorder (!%p113_p2), %s483_s10, 1  ;;  %s541_s15 = smov (!%p113_p2), 112  }
   0x6   : > { %116 = sbr.rel (%p113_p2) target bundleno = 358 (0x166), region = 28  ;;  %s542_s16 = smov (!%p113_p2), 111  }
   0x7   : > { %s543_s17 = smov (!%p113_p2), 113   ;;  %s544_s18 = smov (!%p113_p2), 127  }
   0x8   : > { %s545_s19 = smov (!%p113_p2), 1   ;;  %s547_s20 = smov (!%p113_p2), 15  }
   0x9   : > { %s548_s21 = smov (!%p113_p2), 16   ;;  %s549_s22 = smov (!%p113_p2), 17  }
   0xb   : > { %s733_s10 = smov (!%p134_p3, %s483_s10), 1  ;;  %v546_v2 = vmov 0.0   ;;  %v144_v3 = vlaneseq  ;;  %vm199_vm8 = vcmask 1043456   ;;  %v179_v61 = vld [vmem:[%s716_s1] sm:$0xff] }
   0xc   : > { %s495_s11 = sshll.u32 %s733_s10, 3  ;;  %419 = vmatprep.mubr.f32.mxu0 %v546_v2  ;;  %s496_s25 = sshll.u32 %s733_s10, 4 }
   0xd   : > { %s138_s14 = scalar_lea.vmem %s715_s0, %s495_s11  ;;  %v601_v4 = vand.u32 127, %v144_v3  ;;  %s143_s28 = scalar_lea.vmem %s717_s2, %s496_s25 }
   0xe   : > { %v579_v0 = vld [vmem:[%s138_s14] sm:$0xff] }
   0xf   : > { %297 = vrot.lane.b32.xlu1 %v579_v0, %s541_s15  ;;  %314 = vrot.lane.b32.xlu0 %v579_v0, %s542_s16  ;;  %v585_v1 = vcombine.high %v579_v0, %v579_v0  ;;  %v146_v5 = vadd.s32 128, %v601_v4  ;;  %v151_v9 = vand.u32 15, %v601_v4  ;;  %vm301_vm2 = vcmp.lt.s32.totalorder %v601_v4, 112 }
  0x10   : > { %vm318_vm3 = vcmp.lt.s32.totalorder %v601_v4, 111  ;;  %vm282_vm7 = vcmp.lt.s32.totalorder %v601_v4, 113  ;;  %vm265_vm9 = vcmp.lt.s32.totalorder %v601_v4, 127  ;;  %vm244_vm12 = vcmp.lt.s32.totalorder %v601_v4, 1 }
  0x11   : > { %v158_v8 = vand.u32 15, %v146_v5  ;;  %vm174_vm1 = vcmp.lt.s32.totalorder %v146_v5, 240  ;;  %vm618_vm5 = vcmp.le.s32.totalorder %v151_v9, 14  ;;  %vm643_vm11 = vcmp.ge.s32.totalorder %v151_v9, 1 }
  0x12   : > { %vm171_vm13 = vcmp.ge.s32.totalorder %v601_v4, 16  ;;  %vm225_vm14 = vcmp.lt.s32.totalorder %v601_v4, 15 }
  0x13   : > { %278 = vrot.lane.b32.xlu0 %v579_v0, %s543_s17  ;;  %299 = vrot.lane.b32.xlu1 %v585_v1, %s541_s15  ;;  %vm605_vm0 = vcmp.le.s32.totalorder %v158_v8, 14  ;;  %vm622_vm6 = vcmp.ge.s32.totalorder %v158_v8, 1  ;;  %vm673_vm15 = vmand %vm171_vm13, %vm618_vm5 }
  0x14   : > { %vm614_vm4 = vmand %vm174_vm1, %vm605_vm0 }
  0x15   : > { %vm637_vm10 = vmand %vm174_vm1, %vm622_vm6 }
  0x17   : > { %280 = vrot.lane.b32.xlu1 %v585_v1, %s543_s17  ;;  %316 = vrot.lane.b32.xlu0 %v585_v1, %s542_s16 }
  0x1b   : > { %263 = vrot.lane.b32.xlu1 %v585_v1, %s544_s18  ;;  %261 = vrot.lane.b32.xlu0 %v579_v0, %s544_s18 }
  0x1f   : > { %242 = vrot.lane.b32.xlu1 %v585_v1, %s545_s19  ;;  %240 = vrot.lane.b32.xlu0 %v579_v0, %s545_s19 }
  0x23   : > { %223 = vrot.lane.b32.xlu1 %v585_v1, %s547_s20  ;;  %221 = vrot.lane.b32.xlu0 %v579_v0, %s547_s20 }
  0x27   : > { %206 = vrot.lane.b32.xlu1 %v585_v1, %s548_s21  ;;  %204 = vrot.lane.b32.xlu0 %v579_v0, %s548_s21 }
  0x2b   : > { %186 = vrot.lane.b32.xlu1 %v585_v1, %s549_s22  ;;  %184 = vrot.lane.b32.xlu0 %v579_v0, %s549_s22 }
  0x81   : > { %v298_v6 = vpop.permute.xlu1 %297  ;;  %v315_v7 = vpop.permute.xlu0 %314 }
  0x85   : > { %v279_v10 = vpop.permute.xlu0 %278  ;;  %v300_v11 = vpop.permute.xlu1 %299 }
  0x86   : > { %v303_v18 = vsel %vm301_vm2, %v300_v11, %v298_v6  ;;  %v302_v30 = vsel %vm301_vm2, %v298_v6, %v300_v11  ;;  %vm191_vm2 = vmand %vm171_vm13, %vm643_vm11 }
  0x87   : > { %v309_v25 = vsel %vm174_vm1, %v303_v18, 0.0  ;;  %vm208_vm1 = vcmp.lt.s32.totalorder %v601_v4, 16 }
  0x89   : > { %v281_v16 = vpop.permute.xlu1 %280  ;;  %v317_v17 = vpop.permute.xlu0 %316 }
  0x8a   : > { %v319_v19 = vsel %vm318_vm3, %v315_v7, %v317_v17  ;;  %v320_v20 = vsel %vm318_vm3, %v317_v17, %v315_v7  ;;  %v284_v24 = vsel %vm282_vm7, %v281_v16, %v279_v10  ;;  %v283_v27 = vsel %vm282_vm7, %v279_v10, %v281_v16 }
  0x8b   : > { %v328_v21 = vsel %vm614_vm4, %v320_v20, 0.0  ;;  %v327_v22 = vsel %vm618_vm5, %v319_v19, 0.0  ;;  %v292_v32 = vsel %vm637_vm10, %v284_v24, 0.0  ;;  %v291_v34 = vsel %vm643_vm11, %v283_v27, 0.0 }
  0x8c   : > { %497 = vmatprep.subr.msk.mxu0 %vm199_vm8, %v328_v21  ;;  %vm351_vm3 = vcmask 588800  }
  0x8d   : > { %v264_v28 = vpop.permute.xlu1 %263  ;;  %498 = vmatpush1.msk.msra.mxu0 %vm199_vm8, %v327_v22  ;;  %v262_v29 = vpop.permute.xlu0 %261 }
  0x8e   : > { %v267_v31 = vsel %vm265_vm9, %v264_v28, %v262_v29  ;;  %499 = vmatprep.subr.msk.mxu0 %vm199_vm8, %v309_v25  ;;  %v266_v33 = vsel %vm265_vm9, %v262_v29, %v264_v28 }
  0x8f   : > { %500 = vmatpush1.msk.msra.mxu0 %vm199_vm8, %v302_v30  ;;  %v273_v35 = vsel %vm605_vm0, %v267_v31, 0.0  ;;  %v272_v38 = vsel %vm618_vm5, %v266_v33, 0.0 }
  0x90   : > { %501 = vmatprep.subr.msk.mxu0 %vm199_vm8, %v292_v32 }
  0x91   : > { %v243_v36 = vpop.permute.xlu1 %242  ;;  %502 = vmatpush1.msk.msra.mxu0 %vm199_vm8, %v291_v34  ;;  %v241_v37 = vpop.permute.xlu0 %240 }
  0x92   : > { %v245_v39 = vsel %vm244_vm12, %v241_v37, %v243_v36  ;;  %503 = vmatprep.subr.msk.mxu0 %vm199_vm8, %v273_v35  ;;  %v246_v40 = vsel %vm244_vm12, %v243_v36, %v241_v37 }
  0x93   : > { %504 = vmatpush1.msk.msra.mxu0 %vm199_vm8, %v272_v38  ;;  %v252_v42 = vsel %vm622_vm6, %v245_v39, 0.0  ;;  %v251_v45 = vsel %vm643_vm11, %v246_v40, 0.0 }
  0x94   : > { %505 = vmatprep.subr.msk.mxu0 %vm199_vm8, %v585_v1 }
  0x95   : > { %v224_v43 = vpop.permute.xlu1 %223  ;;  %506 = vmatpush1.msk.msra.mxu0 %vm199_vm8, %v579_v0  ;;  %v222_v44 = vpop.permute.xlu0 %221 }
  0x96   : > { %v226_v46 = vsel %vm225_vm14, %v222_v44, %v224_v43  ;;  %v227_v47 = vsel %vm225_vm14, %v224_v43, %v222_v44  ;;  %507 = vmatprep.subr.msk.mxu0 %vm199_vm8, %v252_v42 }
  0x97   : > { %v234_v48 = vsel %vm673_vm15, %v227_v47, 0.0  ;;  %v235_v49 = vsel %vm605_vm0, %v226_v46, 0.0  ;;  %508 = vmatpush1.msk.msra.mxu0 %vm199_vm8, %v251_v45  ;;  %vm188_vm0 = vcmp.lt.s32.totalorder %v601_v4, 17 }
  0x98   : > { %509 = vmatprep.subr.msk.mxu0 %vm199_vm8, %v235_v49 }
  0x99   : > { %v207_v50 = vpop.permute.xlu1 %206  ;;  %510 = vmatpush1.msk.msra.mxu0 %vm199_vm8, %v234_v48  ;;  %v205_v51 = vpop.permute.xlu0 %204 }
  0x9a   : > { %v209_v52 = vsel %vm208_vm1, %v205_v51, %v207_v50  ;;  %v210_v53 = vsel %vm208_vm1, %v207_v50, %v205_v51 }
  0x9b   : > { %v215_v54 = vsel %vm171_vm13, %v210_v53, 0.0  ;;  %511 = vmatprep.subr.msk.mxu0 %vm199_vm8, %v209_v52 }
  0x9c   : > { %512 = vmatpush1.msk.msra.mxu0 %vm199_vm8, %v215_v54 }
  0x9d   : > { %v187_v55 = vpop.permute.xlu1 %186  ;;  %v185_v56 = vpop.permute.xlu0 %184 }
  0x9e   : > { %v189_v57 = vsel %vm188_vm0, %v185_v56, %v187_v55  ;;  %v190_v58 = vsel %vm188_vm0, %v187_v55, %v185_v56 }
  0x9f   : > { %v197_v59 = vsel %vm191_vm2, %v190_v58, 0.0  ;;  %v198_v60 = vsel %vm622_vm6, %v189_v57, 0.0 }
  0xa0   : > { %513 = vmatprep.subr.msk.mxu0 %vm199_vm8, %v198_v60 }
  0xa1   : > { %514 = vmatpush1.msk.msra.mxu0 %vm199_vm8, %v197_v59 }
  0xa2   : > { %492 = vmatmul.mubr.msk.f32.vlgmr.msra.gmra.mxu0 %vm351_vm3, %v179_v61 }
 0x162   : > { %v421_v62 = vpop.f32.mrf.mxu0 }
 0x163   : > { %426 = vst [vmem:[%s143_s28] sm:$0xff] %v421_v62 }
 0x164   : > { %v423_v63 = vpop.f32.mrf.mxu0 }
 0x165   : > { %427 = vst [vmem:[%s143_s28 + $0x8] sm:$0xff] %v423_v63 }
 0x166 PF: > { %s12_s9 = sadd.s32 1, %s539_s9  }
 0x167   : > { %p9_p4 = scmp.ge.s32.totalorder %s12_s9, 4  }
 0x169   :  { %11 = sbr.rel (!%p9_p4) target bundleno = 1 (0x1), region = 58 }

</bundles_post_ra>
